<compile_context>
chip_gen: v7x
topology: tpu7x:2x2x1
jax: 0.10.0
libtpu: 0.0.40
codegen_flags: <defaults>
</compile_context>

<pallas_src>
import functools

import jax
import jax.numpy as jnp
import numpy as np
from jax.experimental import pallas as pl
from jax.experimental.pallas import tpu as pltpu


# ----------------------------------------------------------------------------
# Pallas kernel: separable bilinear warp + cost volume reduction (per Q tile)
# ----------------------------------------------------------------------------
def _cost_volume_kernel(img_l_ref, img_r_ref, grid_l_ref, grid_r_ref, out_ref,
                        *, channels, height, width):
    tq = grid_l_ref.shape[2]                       # Q tile size (mult of 128)

    # Tile-sized iotas only (no HW x Q materialization).
    cols_x = jax.lax.broadcasted_iota(jnp.int32, (width, tq), 0)   # (W, TQ)
    cols_y = jax.lax.broadcasted_iota(jnp.int32, (height, tq), 0)  # (H, TQ)

    def axis_taps(coord, size, cols):
        """Bilinear taps along one axis; zeros-padding validity folded in.
        coord: (1, TQ) pixel coordinate.  Returns (size, TQ) tap weights."""
        c0f = jnp.floor(coord)
        c0 = c0f.astype(jnp.int32)
        f = coord - c0f
        w0 = jnp.where((c0 >= 0) & (c0 < size), 1.0 - f, 0.0)      # (1, TQ)
        w1 = jnp.where((c0 + 1 >= 0) & (c0 + 1 < size), f, 0.0)    # (1, TQ)
        return (jnp.where(cols == c0, w0, 0.0)
                + jnp.where(cols == c0 + 1, w1, 0.0))              # (size, TQ)

    def warp_x(img_ref, grid_ref):
        """x-stage gather as an MXU matmul.  Returns ((C*H, TQ) f32, (H, TQ))."""
        g = grid_ref[0]                                            # (2, TQ)
        oh_x = axis_taps(g[0:1, :], width, cols_x)                 # (W, TQ)
        oh_y = axis_taps(g[1:2, :], height, cols_y)                # (H, TQ)
        img = img_ref[0].astype(jnp.bfloat16)                      # (C*H, W)
        t = jnp.dot(img, oh_x.astype(jnp.bfloat16),
                    preferred_element_type=jnp.float32)            # (C*H, TQ)
        return t, oh_y

    # Build-and-consume left first, then right (small live temporaries).
    t_l, ohy_l = warp_x(img_l_ref, grid_l_ref)
    t_r, ohy_r = warp_x(img_r_ref, grid_r_ref)

    # y-stage (broadcast-multiply + sublane reduce over H) + channel mean.
    cost = jnp.zeros((1, tq), jnp.float32)
    for c in range(channels):
        sl = slice(c * height, (c + 1) * height)
        wl = jnp.sum(t_l[sl] * ohy_l, axis=0, keepdims=True)       # (1, TQ)
        wr = jnp.sum(t_r[sl] * ohy_r, axis=0, keepdims=True)       # (1, TQ)
        cost = cost + wl * wr
    out_ref[0] = cost * (1.0 / channels)


def pallas_cost_volume(left_img, right_img, grid_l, grid_r, num_sample, *,
                       tq=512):
    b, c, h, w = left_img.shape
    q = num_sample * h * w

    # Q tile: multiple of 128 (lane-dense stores); pad Q if necessary.
    tq = max(128, min(int(tq), pl.cdiv(q, 128) * 128))
    tq = (tq // 128) * 128
    q_pad = pl.cdiv(q, tq) * tq
    if q_pad != q:
        pad = ((0, 0), (0, 0), (0, q_pad - q))
        # -2.0 -> both bilinear taps out of bounds -> zero contribution
        grid_l = jnp.pad(grid_l, pad, constant_values=-2.0)
        grid_r = jnp.pad(grid_r, pad, constant_values=-2.0)
    n_tiles = q_pad // tq

    # Images laid out as (B, C*H, W) slabs for the separable x-matmul.
    img_l = left_img.reshape(b, c * h, w)
    img_r = right_img.reshape(b, c * h, w)

    kernel = functools.partial(_cost_volume_kernel,
                               channels=c, height=h, width=w)
    flops = 2 * b * 2 * (c * h) * w * q_pad          # the two gather-matmuls
    bytes_accessed = 4 * (2 * b * c * h * w + 2 * b * 2 * q_pad + b * q_pad)

    out = pl.pallas_call(
        kernel,
        out_shape=jax.ShapeDtypeStruct((b, 1, q_pad), jnp.float32),
        grid=(b, n_tiles),
        in_specs=[
            pl.BlockSpec((1, c * h, w), lambda i, j: (i, 0, 0)),   # resident
            pl.BlockSpec((1, c * h, w), lambda i, j: (i, 0, 0)),   # resident
            pl.BlockSpec((1, 2, tq), lambda i, j: (i, 0, j)),
            pl.BlockSpec((1, 2, tq), lambda i, j: (i, 0, j)),
        ],
        out_specs=pl.BlockSpec((1, 1, tq), lambda i, j: (i, 0, j)),
        compiler_params=pltpu.CompilerParams(
            dimension_semantics=("parallel", "parallel"),
            vmem_limit_bytes=32 * 1024 * 1024),
        cost_estimate=pl.CostEstimate(flops=flops, transcendentals=0,
                                      bytes_accessed=bytes_accessed),
    )(img_l, img_r, grid_l, grid_r)
    return out[:, 0, :q].reshape(b, num_sample, h, w)


# ----------------------------------------------------------------------------
# JAX glue: depth-sample generation + pinhole projection (tiny 4x4 algebra)
# ----------------------------------------------------------------------------
def _projection_grid(src_proj, ref_proj, depth, height, width):
    """Pixel-space sampling coordinates in the source view for every
    (depth sample, pixel) of the reference view.  Returns (B, 2, Ndepth*H*W)."""
    b, nd, h, w = depth.shape
    proj = src_proj @ jnp.linalg.inv(ref_proj)            # (B, 4, 4)
    rot = proj[:, :3, :3]                                  # (B, 3, 3)
    trans = proj[:, :3, 3]                                 # (B, 3)

    y, x = jnp.meshgrid(jnp.arange(h, dtype=jnp.float32),
                        jnp.arange(w, dtype=jnp.float32), indexing="ij")
    xyz = jnp.stack([x.reshape(-1), y.reshape(-1),
                     jnp.ones(h * w, jnp.float32)], axis=0)          # (3, HW)

    rot_xyz = jnp.einsum("bij,jp->bip", rot, xyz)                    # (B, 3, HW)
    d = depth.reshape(b, 1, nd, h * w)
    proj_xyz = rot_xyz[:, :, None, :] * d + trans[:, :, None, None]  # (B,3,Nd,HW)

    neg = proj_xyz[:, 2:3] <= 1e-3
    px = jnp.where(neg, float(w), proj_xyz[:, 0:1])
    py = jnp.where(neg, float(h), proj_xyz[:, 1:2])
    pz = jnp.where(neg, 1.0, proj_xyz[:, 2:3])

    # grid_sample(align_corners=True): normalize/unnormalize cancel -> pixels
    ix = (px / pz).reshape(b, nd * h * w)
    iy = (py / pz).reshape(b, nd * h * w)
    return jnp.stack([ix, iy], axis=1)                               # (B, 2, Q)


def get_volume_forward(left_img, right_img, left_proj, right_proj, gt_proj,
                       num_sample, key, *, tq=512):
    """JAX/Pallas equivalent of GetVolume.forward (device arg is implicit)."""
    b, c, h, w = left_img.shape
    min_depth = jnp.full((b,), 10.0, jnp.float32)
    max_depth = jnp.full((b,), 40.0, jnp.float32)
    inv_min = 1.0 / min_depth
    inv_max = 1.0 / max_depth

    # TODO(synk): torch.rand uses a different RNG stream; jax.random.uniform is
    # used here (still deterministic via PRNGKey(0)).
    depth_sample = (jax.random.uniform(key, (b, num_sample, h, w), jnp.float32)
                    + jnp.arange(num_sample, dtype=jnp.float32)
                      .reshape(1, num_sample, 1, 1))
    depth_sample = (inv_max.reshape(b, 1, 1, 1)
                    + depth_sample / num_sample
                      * (inv_min - inv_max).reshape(b, 1, 1, 1))
    depth_sample = 1.0 / depth_sample                                # (B,Nd,H,W)

    grid_l = _projection_grid(left_proj, gt_proj, depth_sample, h, w)
    grid_r = _projection_grid(right_proj, gt_proj, depth_sample, h, w)

    return pallas_cost_volume(left_img, right_img, grid_l, grid_r,
                              num_sample, tq=tq)


# ----------------------------------------------------------------------------
# Deterministic synthetic projection matrices (K * [R | t] as 4x4)
# ----------------------------------------------------------------------------
def _make_proj(fx, fy, cx, cy, tx, batch):
    k = np.array([[fx, 0.0, cx],
                  [0.0, fy, cy],
                  [0.0, 0.0, 1.0]], np.float32)
    p = np.eye(4, dtype=np.float32)
    p[:3, :3] = k                                  # R = I
    p[:3, 3] = k @ np.array([tx, 0.0, 0.0], np.float32)
    return jnp.asarray(np.tile(p[None], (batch, 1, 1)))


if __name__ == "__main__":
    B, C, H, W = 2, 4, 16, 16
    NUM_SAMPLE = 2

    key = jax.random.PRNGKey(0)
    k_img_l, k_img_r, k_depth = jax.random.split(key, 3)

    left_img = jax.random.normal(k_img_l, (B, C, H, W), jnp.float32)
    right_img = jax.random.normal(k_img_r, (B, C, H, W), jnp.float32)

    f = float(W)
    cx, cy = (W - 1) / 2.0, (H - 1) / 2.0
    gt_proj = _make_proj(f, f, cx, cy, 0.0, B)
    left_proj = _make_proj(f, f, cx, cy, 0.5, B)
    right_proj = _make_proj(f, f, cx, cy, -0.5, B)

    # tq=256 -> 2 Q-tiles per batch element, exercising the tiled/parallel grid
    cost = get_volume_forward(left_img, right_img, left_proj, right_proj,
                              gt_proj, NUM_SAMPLE, k_depth, tq=256)
    cost = jax.block_until_ready(cost)

    assert cost.shape == (B, NUM_SAMPLE, H, W), cost.shape
    assert bool(jnp.all(jnp.isfinite(cost)))
    print("KERNEL_OK")
</pallas_src>

<mosaic_0001>
module attributes {stable_mosaic.version = 11 : i64} {
  func.func @_cost_volume_kernel(%arg0: i32, %arg1: i32, %arg2: memref<1x64x16xf32, #tpu.memory_space<vmem>>, %arg3: memref<1x64x16xf32, #tpu.memory_space<vmem>>, %arg4: memref<1x2x256xf32, #tpu.memory_space<vmem>>, %arg5: memref<1x2x256xf32, #tpu.memory_space<vmem>>, %arg6: memref<1x1x256xf32, #tpu.memory_space<vmem>>) attributes {dimension_semantics = [#tpu.dimension_semantics<parallel>, #tpu.dimension_semantics<parallel>], iteration_bounds = array<i64: 2, 2>, scalar_prefetch = 0 : i64, scratch_operands = 0 : i64, tpu.core_type = #tpu.core_type<tc>, window_params = [{transform_indices = @transform_0, window_bounds = array<i64: 1, 64, 16>}, {transform_indices = @transform_1, window_bounds = array<i64: 1, 64, 16>}, {transform_indices = @transform_2, window_bounds = array<i64: 1, 2, 256>}, {transform_indices = @transform_3, window_bounds = array<i64: 1, 2, 256>}, {transform_indices = @transform_4, window_bounds = array<i64: 1, 1, 256>}]} {
    %0 = tpu.iota {dimensions = array<i32: 0>} : vector<16x256xi32>
    %1 = tpu.iota {dimensions = array<i32: 0>} : vector<16x256xi32>
    %c0 = arith.constant 0 : index
    %c0_0 = arith.constant 0 : index
    %c0_1 = arith.constant 0 : index
    %2 = vector.load %arg4[%c0, %c0_0, %c0_1] : memref<1x2x256xf32, #tpu.memory_space<vmem>>, vector<1x2x256xf32>
    %3 = vector.shape_cast %2 : vector<1x2x256xf32> to vector<2x256xf32>
    %4 = vector.extract_strided_slice %3 {offsets = [0, 0], sizes = [1, 256], strides = [1, 1]} : vector<2x256xf32> to vector<1x256xf32>
    %5 = math.floor %4 : vector<1x256xf32>
    %6 = arith.fptosi %5 : vector<1x256xf32> to vector<1x256xi32>
    %7 = arith.subf %4, %5 : vector<1x256xf32>
    %c0_i32 = arith.constant 0 : i32
    %8 = vector.broadcast %c0_i32 : i32 to vector<1x256xi32>
    %9 = arith.cmpi sge, %6, %8 : vector<1x256xi32>
    %c16_i32 = arith.constant 16 : i32
    %10 = vector.broadcast %c16_i32 : i32 to vector<1x256xi32>
    %11 = arith.cmpi slt, %6, %10 : vector<1x256xi32>
    %12 = arith.andi %9, %11 : vector<1x256xi1>
    %cst = arith.constant 1.000000e+00 : f32
    %13 = vector.broadcast %cst : f32 to vector<1x256xf32>
    %14 = arith.subf %13, %7 : vector<1x256xf32>
    %cst_2 = arith.constant 0.000000e+00 : f32
    %15 = vector.broadcast %cst_2 : f32 to vector<1x256xf32>
    %16 = arith.select %12, %14, %15 : vector<1x256xi1>, vector<1x256xf32>
    %c1_i32 = arith.constant 1 : i32
    %17 = vector.broadcast %c1_i32 : i32 to vector<1x256xi32>
    %18 = arith.addi %6, %17 : vector<1x256xi32>
    %c0_i32_3 = arith.constant 0 : i32
    %19 = vector.broadcast %c0_i32_3 : i32 to vector<1x256xi32>
    %20 = arith.cmpi sge, %18, %19 : vector<1x256xi32>
    %c1_i32_4 = arith.constant 1 : i32
    %21 = vector.broadcast %c1_i32_4 : i32 to vector<1x256xi32>
    %22 = arith.addi %6, %21 : vector<1x256xi32>
    %c16_i32_5 = arith.constant 16 : i32
    %23 = vector.broadcast %c16_i32_5 : i32 to vector<1x256xi32>
    %24 = arith.cmpi slt, %22, %23 : vector<1x256xi32>
    %25 = arith.andi %20, %24 : vector<1x256xi1>
    %cst_6 = arith.constant 0.000000e+00 : f32
    %26 = vector.broadcast %cst_6 : f32 to vector<1x256xf32>
    %27 = arith.select %25, %7, %26 : vector<1x256xi1>, vector<1x256xf32>
    %28 = vector.broadcast %6 : vector<1x256xi32> to vector<16x256xi32>
    %29 = arith.cmpi eq, %0, %28 : vector<16x256xi32>
    %cst_7 = arith.constant 0.000000e+00 : f32
    %30 = vector.shape_cast %16 : vector<1x256xf32> to vector<1x256xf32>
    %31 = vector.broadcast %30 : vector<1x256xf32> to vector<16x256xf32>
    %32 = vector.broadcast %cst_7 : f32 to vector<16x256xf32>
    %33 = arith.select %29, %31, %32 : vector<16x256xi1>, vector<16x256xf32>
    %c1_i32_8 = arith.constant 1 : i32
    %34 = vector.broadcast %c1_i32_8 : i32 to vector<1x256xi32>
    %35 = arith.addi %6, %34 : vector<1x256xi32>
    %36 = vector.broadcast %35 : vector<1x256xi32> to vector<16x256xi32>
    %37 = arith.cmpi eq, %0, %36 : vector<16x256xi32>
    %cst_9 = arith.constant 0.000000e+00 : f32
    %38 = vector.shape_cast %27 : vector<1x256xf32> to vector<1x256xf32>
    %39 = vector.broadcast %38 : vector<1x256xf32> to vector<16x256xf32>
    %40 = vector.broadcast %cst_9 : f32 to vector<16x256xf32>
    %41 = arith.select %37, %39, %40 : vector<16x256xi1>, vector<16x256xf32>
    %42 = arith.addf %33, %41 : vector<16x256xf32>
    %43 = vector.extract_strided_slice %3 {offsets = [1, 0], sizes = [1, 256], strides = [1, 1]} : vector<2x256xf32> to vector<1x256xf32>
    %44 = math.floor %43 : vector<1x256xf32>
    %45 = arith.fptosi %44 : vector<1x256xf32> to vector<1x256xi32>
    %46 = arith.subf %43, %44 : vector<1x256xf32>
    %c0_i32_10 = arith.constant 0 : i32
    %47 = vector.broadcast %c0_i32_10 : i32 to vector<1x256xi32>
    %48 = arith.cmpi sge, %45, %47 : vector<1x256xi32>
    %c16_i32_11 = arith.constant 16 : i32
    %49 = vector.broadcast %c16_i32_11 : i32 to vector<1x256xi32>
    %50 = arith.cmpi slt, %45, %49 : vector<1x256xi32>
    %51 = arith.andi %48, %50 : vector<1x256xi1>
    %cst_12 = arith.constant 1.000000e+00 : f32
    %52 = vector.broadcast %cst_12 : f32 to vector<1x256xf32>
    %53 = arith.subf %52, %46 : vector<1x256xf32>
    %cst_13 = arith.constant 0.000000e+00 : f32
    %54 = vector.broadcast %cst_13 : f32 to vector<1x256xf32>
    %55 = arith.select %51, %53, %54 : vector<1x256xi1>, vector<1x256xf32>
    %c1_i32_14 = arith.constant 1 : i32
    %56 = vector.broadcast %c1_i32_14 : i32 to vector<1x256xi32>
    %57 = arith.addi %45, %56 : vector<1x256xi32>
    %c0_i32_15 = arith.constant 0 : i32
    %58 = vector.broadcast %c0_i32_15 : i32 to vector<1x256xi32>
    %59 = arith.cmpi sge, %57, %58 : vector<1x256xi32>
    %c1_i32_16 = arith.constant 1 : i32
    %60 = vector.broadcast %c1_i32_16 : i32 to vector<1x256xi32>
    %61 = arith.addi %45, %60 : vector<1x256xi32>
    %c16_i32_17 = arith.constant 16 : i32
    %62 = vector.broadcast %c16_i32_17 : i32 to vector<1x256xi32>
    %63 = arith.cmpi slt, %61, %62 : vector<1x256xi32>
    %64 = arith.andi %59, %63 : vector<1x256xi1>
    %cst_18 = arith.constant 0.000000e+00 : f32
    %65 = vector.broadcast %cst_18 : f32 to vector<1x256xf32>
    %66 = arith.select %64, %46, %65 : vector<1x256xi1>, vector<1x256xf32>
    %67 = vector.broadcast %45 : vector<1x256xi32> to vector<16x256xi32>
    %68 = arith.cmpi eq, %1, %67 : vector<16x256xi32>
    %cst_19 = arith.constant 0.000000e+00 : f32
    %69 = vector.shape_cast %55 : vector<1x256xf32> to vector<1x256xf32>
    %70 = vector.broadcast %69 : vector<1x256xf32> to vector<16x256xf32>
    %71 = vector.broadcast %cst_19 : f32 to vector<16x256xf32>
    %72 = arith.select %68, %70, %71 : vector<16x256xi1>, vector<16x256xf32>
    %c1_i32_20 = arith.constant 1 : i32
    %73 = vector.broadcast %c1_i32_20 : i32 to vector<1x256xi32>
    %74 = arith.addi %45, %73 : vector<1x256xi32>
    %75 = vector.broadcast %74 : vector<1x256xi32> to vector<16x256xi32>
    %76 = arith.cmpi eq, %1, %75 : vector<16x256xi32>
    %cst_21 = arith.constant 0.000000e+00 : f32
    %77 = vector.shape_cast %66 : vector<1x256xf32> to vector<1x256xf32>
    %78 = vector.broadcast %77 : vector<1x256xf32> to vector<16x256xf32>
    %79 = vector.broadcast %cst_21 : f32 to vector<16x256xf32>
    %80 = arith.select %76, %78, %79 : vector<16x256xi1>, vector<16x256xf32>
    %81 = arith.addf %72, %80 : vector<16x256xf32>
    %c0_22 = arith.constant 0 : index
    %c0_23 = arith.constant 0 : index
    %c0_24 = arith.constant 0 : index
    %82 = vector.load %arg2[%c0_22, %c0_23, %c0_24] : memref<1x64x16xf32, #tpu.memory_space<vmem>>, vector<1x64x16xf32>
    %83 = vector.shape_cast %82 : vector<1x64x16xf32> to vector<64x16xf32>
    %84 = arith.truncf %83 : vector<64x16xf32> to vector<64x16xbf16>
    %85 = arith.truncf %42 : vector<16x256xf32> to vector<16x256xbf16>
    %cst_25 = arith.constant dense<0.000000e+00> : vector<64x256xf32>
    %86 = tpu.matmul %84, %85, %cst_25 {dimension_numbers = #tpu.dot_dimension_numbers<[1], [0], [0], [1], [0, 0, 1, 1], [], []>} : vector<64x16xbf16>, vector<16x256xbf16>, vector<64x256xf32> -> vector<64x256xf32>
    %c0_26 = arith.constant 0 : index
    %c0_27 = arith.constant 0 : index
    %c0_28 = arith.constant 0 : index
    %87 = vector.load %arg5[%c0_26, %c0_27, %c0_28] : memref<1x2x256xf32, #tpu.memory_space<vmem>>, vector<1x2x256xf32>
    %88 = vector.shape_cast %87 : vector<1x2x256xf32> to vector<2x256xf32>
    %89 = vector.extract_strided_slice %88 {offsets = [0, 0], sizes = [1, 256], strides = [1, 1]} : vector<2x256xf32> to vector<1x256xf32>
    %90 = math.floor %89 : vector<1x256xf32>
    %91 = arith.fptosi %90 : vector<1x256xf32> to vector<1x256xi32>
    %92 = arith.subf %89, %90 : vector<1x256xf32>
    %c0_i32_29 = arith.constant 0 : i32
    %93 = vector.broadcast %c0_i32_29 : i32 to vector<1x256xi32>
    %94 = arith.cmpi sge, %91, %93 : vector<1x256xi32>
    %c16_i32_30 = arith.constant 16 : i32
    %95 = vector.broadcast %c16_i32_30 : i32 to vector<1x256xi32>
    %96 = arith.cmpi slt, %91, %95 : vector<1x256xi32>
    %97 = arith.andi %94, %96 : vector<1x256xi1>
    %cst_31 = arith.constant 1.000000e+00 : f32
    %98 = vector.broadcast %cst_31 : f32 to vector<1x256xf32>
    %99 = arith.subf %98, %92 : vector<1x256xf32>
    %cst_32 = arith.constant 0.000000e+00 : f32
    %100 = vector.broadcast %cst_32 : f32 to vector<1x256xf32>
    %101 = arith.select %97, %99, %100 : vector<1x256xi1>, vector<1x256xf32>
    %c1_i32_33 = arith.constant 1 : i32
    %102 = vector.broadcast %c1_i32_33 : i32 to vector<1x256xi32>
    %103 = arith.addi %91, %102 : vector<1x256xi32>
    %c0_i32_34 = arith.constant 0 : i32
    %104 = vector.broadcast %c0_i32_34 : i32 to vector<1x256xi32>
    %105 = arith.cmpi sge, %103, %104 : vector<1x256xi32>
    %c1_i32_35 = arith.constant 1 : i32
    %106 = vector.broadcast %c1_i32_35 : i32 to vector<1x256xi32>
    %107 = arith.addi %91, %106 : vector<1x256xi32>
    %c16_i32_36 = arith.constant 16 : i32
    %108 = vector.broadcast %c16_i32_36 : i32 to vector<1x256xi32>
    %109 = arith.cmpi slt, %107, %108 : vector<1x256xi32>
    %110 = arith.andi %105, %109 : vector<1x256xi1>
    %cst_37 = arith.constant 0.000000e+00 : f32
    %111 = vector.broadcast %cst_37 : f32 to vector<1x256xf32>
    %112 = arith.select %110, %92, %111 : vector<1x256xi1>, vector<1x256xf32>
    %113 = vector.broadcast %91 : vector<1x256xi32> to vector<16x256xi32>
    %114 = arith.cmpi eq, %0, %113 : vector<16x256xi32>
    %cst_38 = arith.constant 0.000000e+00 : f32
    %115 = vector.shape_cast %101 : vector<1x256xf32> to vector<1x256xf32>
    %116 = vector.broadcast %115 : vector<1x256xf32> to vector<16x256xf32>
    %117 = vector.broadcast %cst_38 : f32 to vector<16x256xf32>
    %118 = arith.select %114, %116, %117 : vector<16x256xi1>, vector<16x256xf32>
    %c1_i32_39 = arith.constant 1 : i32
    %119 = vector.broadcast %c1_i32_39 : i32 to vector<1x256xi32>
    %120 = arith.addi %91, %119 : vector<1x256xi32>
    %121 = vector.broadcast %120 : vector<1x256xi32> to vector<16x256xi32>
    %122 = arith.cmpi eq, %0, %121 : vector<16x256xi32>
    %cst_40 = arith.constant 0.000000e+00 : f32
    %123 = vector.shape_cast %112 : vector<1x256xf32> to vector<1x256xf32>
    %124 = vector.broadcast %123 : vector<1x256xf32> to vector<16x256xf32>
    %125 = vector.broadcast %cst_40 : f32 to vector<16x256xf32>
    %126 = arith.select %122, %124, %125 : vector<16x256xi1>, vector<16x256xf32>
    %127 = arith.addf %118, %126 : vector<16x256xf32>
    %128 = vector.extract_strided_slice %88 {offsets = [1, 0], sizes = [1, 256], strides = [1, 1]} : vector<2x256xf32> to vector<1x256xf32>
    %129 = math.floor %128 : vector<1x256xf32>
    %130 = arith.fptosi %129 : vector<1x256xf32> to vector<1x256xi32>
    %131 = arith.subf %128, %129 : vector<1x256xf32>
    %c0_i32_41 = arith.constant 0 : i32
    %132 = vector.broadcast %c0_i32_41 : i32 to vector<1x256xi32>
    %133 = arith.cmpi sge, %130, %132 : vector<1x256xi32>
    %c16_i32_42 = arith.constant 16 : i32
    %134 = vector.broadcast %c16_i32_42 : i32 to vector<1x256xi32>
    %135 = arith.cmpi slt, %130, %134 : vector<1x256xi32>
    %136 = arith.andi %133, %135 : vector<1x256xi1>
    %cst_43 = arith.constant 1.000000e+00 : f32
    %137 = vector.broadcast %cst_43 : f32 to vector<1x256xf32>
    %138 = arith.subf %137, %131 : vector<1x256xf32>
    %cst_44 = arith.constant 0.000000e+00 : f32
    %139 = vector.broadcast %cst_44 : f32 to vector<1x256xf32>
    %140 = arith.select %136, %138, %139 : vector<1x256xi1>, vector<1x256xf32>
    %c1_i32_45 = arith.constant 1 : i32
    %141 = vector.broadcast %c1_i32_45 : i32 to vector<1x256xi32>
    %142 = arith.addi %130, %141 : vector<1x256xi32>
    %c0_i32_46 = arith.constant 0 : i32
    %143 = vector.broadcast %c0_i32_46 : i32 to vector<1x256xi32>
    %144 = arith.cmpi sge, %142, %143 : vector<1x256xi32>
    %c1_i32_47 = arith.constant 1 : i32
    %145 = vector.broadcast %c1_i32_47 : i32 to vector<1x256xi32>
    %146 = arith.addi %130, %145 : vector<1x256xi32>
    %c16_i32_48 = arith.constant 16 : i32
    %147 = vector.broadcast %c16_i32_48 : i32 to vector<1x256xi32>
    %148 = arith.cmpi slt, %146, %147 : vector<1x256xi32>
    %149 = arith.andi %144, %148 : vector<1x256xi1>
    %cst_49 = arith.constant 0.000000e+00 : f32
    %150 = vector.broadcast %cst_49 : f32 to vector<1x256xf32>
    %151 = arith.select %149, %131, %150 : vector<1x256xi1>, vector<1x256xf32>
    %152 = vector.broadcast %130 : vector<1x256xi32> to vector<16x256xi32>
    %153 = arith.cmpi eq, %1, %152 : vector<16x256xi32>
    %cst_50 = arith.constant 0.000000e+00 : f32
    %154 = vector.shape_cast %140 : vector<1x256xf32> to vector<1x256xf32>
    %155 = vector.broadcast %154 : vector<1x256xf32> to vector<16x256xf32>
    %156 = vector.broadcast %cst_50 : f32 to vector<16x256xf32>
    %157 = arith.select %153, %155, %156 : vector<16x256xi1>, vector<16x256xf32>
    %c1_i32_51 = arith.constant 1 : i32
    %158 = vector.broadcast %c1_i32_51 : i32 to vector<1x256xi32>
    %159 = arith.addi %130, %158 : vector<1x256xi32>
    %160 = vector.broadcast %159 : vector<1x256xi32> to vector<16x256xi32>
    %161 = arith.cmpi eq, %1, %160 : vector<16x256xi32>
    %cst_52 = arith.constant 0.000000e+00 : f32
    %162 = vector.shape_cast %151 : vector<1x256xf32> to vector<1x256xf32>
    %163 = vector.broadcast %162 : vector<1x256xf32> to vector<16x256xf32>
    %164 = vector.broadcast %cst_52 : f32 to vector<16x256xf32>
    %165 = arith.select %161, %163, %164 : vector<16x256xi1>, vector<16x256xf32>
    %166 = arith.addf %157, %165 : vector<16x256xf32>
    %c0_53 = arith.constant 0 : index
    %c0_54 = arith.constant 0 : index
    %c0_55 = arith.constant 0 : index
    %167 = vector.load %arg3[%c0_53, %c0_54, %c0_55] : memref<1x64x16xf32, #tpu.memory_space<vmem>>, vector<1x64x16xf32>
    %168 = vector.shape_cast %167 : vector<1x64x16xf32> to vector<64x16xf32>
    %169 = arith.truncf %168 : vector<64x16xf32> to vector<64x16xbf16>
    %170 = arith.truncf %127 : vector<16x256xf32> to vector<16x256xbf16>
    %cst_56 = arith.constant dense<0.000000e+00> : vector<64x256xf32>
    %171 = tpu.matmul %169, %170, %cst_56 {dimension_numbers = #tpu.dot_dimension_numbers<[1], [0], [0], [1], [0, 0, 1, 1], [], []>} : vector<64x16xbf16>, vector<16x256xbf16>, vector<64x256xf32> -> vector<64x256xf32>
    %cst_57 = arith.constant 0.000000e+00 : f32
    %172 = vector.broadcast %cst_57 : f32 to vector<1x256xf32>
    %173 = vector.extract_strided_slice %86 {offsets = [0, 0], sizes = [16, 256], strides = [1, 1]} : vector<64x256xf32> to vector<16x256xf32>
    %174 = arith.mulf %173, %81 : vector<16x256xf32>
    %cst_58 = arith.constant dense<0.000000e+00> : vector<256xf32>
    %175 = vector.multi_reduction <add>, %174, %cst_58 [0] : vector<16x256xf32> to vector<256xf32>
    %176 = vector.shape_cast %175 : vector<256xf32> to vector<1x256xf32>
    %177 = vector.extract_strided_slice %171 {offsets = [0, 0], sizes = [16, 256], strides = [1, 1]} : vector<64x256xf32> to vector<16x256xf32>
    %178 = arith.mulf %177, %166 : vector<16x256xf32>
    %cst_59 = arith.constant dense<0.000000e+00> : vector<256xf32>
    %179 = vector.multi_reduction <add>, %178, %cst_59 [0] : vector<16x256xf32> to vector<256xf32>
    %180 = vector.shape_cast %179 : vector<256xf32> to vector<1x256xf32>
    %181 = arith.mulf %176, %180 : vector<1x256xf32>
    %182 = arith.addf %172, %181 : vector<1x256xf32>
    %183 = vector.extract_strided_slice %86 {offsets = [16, 0], sizes = [16, 256], strides = [1, 1]} : vector<64x256xf32> to vector<16x256xf32>
    %184 = arith.mulf %183, %81 : vector<16x256xf32>
    %cst_60 = arith.constant dense<0.000000e+00> : vector<256xf32>
    %185 = vector.multi_reduction <add>, %184, %cst_60 [0] : vector<16x256xf32> to vector<256xf32>
    %186 = vector.shape_cast %185 : vector<256xf32> to vector<1x256xf32>
    %187 = vector.extract_strided_slice %171 {offsets = [16, 0], sizes = [16, 256], strides = [1, 1]} : vector<64x256xf32> to vector<16x256xf32>
    %188 = arith.mulf %187, %166 : vector<16x256xf32>
    %cst_61 = arith.constant dense<0.000000e+00> : vector<256xf32>
    %189 = vector.multi_reduction <add>, %188, %cst_61 [0] : vector<16x256xf32> to vector<256xf32>
    %190 = vector.shape_cast %189 : vector<256xf32> to vector<1x256xf32>
    %191 = arith.mulf %186, %190 : vector<1x256xf32>
    %192 = arith.addf %182, %191 : vector<1x256xf32>
    %193 = vector.extract_strided_slice %86 {offsets = [32, 0], sizes = [16, 256], strides = [1, 1]} : vector<64x256xf32> to vector<16x256xf32>
    %194 = arith.mulf %193, %81 : vector<16x256xf32>
    %cst_62 = arith.constant dense<0.000000e+00> : vector<256xf32>
    %195 = vector.multi_reduction <add>, %194, %cst_62 [0] : vector<16x256xf32> to vector<256xf32>
    %196 = vector.shape_cast %195 : vector<256xf32> to vector<1x256xf32>
    %197 = vector.extract_strided_slice %171 {offsets = [32, 0], sizes = [16, 256], strides = [1, 1]} : vector<64x256xf32> to vector<16x256xf32>
    %198 = arith.mulf %197, %166 : vector<16x256xf32>
    %cst_63 = arith.constant dense<0.000000e+00> : vector<256xf32>
    %199 = vector.multi_reduction <add>, %198, %cst_63 [0] : vector<16x256xf32> to vector<256xf32>
    %200 = vector.shape_cast %199 : vector<256xf32> to vector<1x256xf32>
    %201 = arith.mulf %196, %200 : vector<1x256xf32>
    %202 = arith.addf %192, %201 : vector<1x256xf32>
    %203 = vector.extract_strided_slice %86 {offsets = [48, 0], sizes = [16, 256], strides = [1, 1]} : vector<64x256xf32> to vector<16x256xf32>
    %204 = arith.mulf %203, %81 : vector<16x256xf32>
    %cst_64 = arith.constant dense<0.000000e+00> : vector<256xf32>
    %205 = vector.multi_reduction <add>, %204, %cst_64 [0] : vector<16x256xf32> to vector<256xf32>
    %206 = vector.shape_cast %205 : vector<256xf32> to vector<1x256xf32>
    %207 = vector.extract_strided_slice %171 {offsets = [48, 0], sizes = [16, 256], strides = [1, 1]} : vector<64x256xf32> to vector<16x256xf32>
    %208 = arith.mulf %207, %166 : vector<16x256xf32>
    %cst_65 = arith.constant dense<0.000000e+00> : vector<256xf32>
    %209 = vector.multi_reduction <add>, %208, %cst_65 [0] : vector<16x256xf32> to vector<256xf32>
    %210 = vector.shape_cast %209 : vector<256xf32> to vector<1x256xf32>
    %211 = arith.mulf %206, %210 : vector<1x256xf32>
    %212 = arith.addf %202, %211 : vector<1x256xf32>
    %cst_66 = arith.constant 2.500000e-01 : f32
    %213 = vector.broadcast %cst_66 : f32 to vector<1x256xf32>
    %214 = arith.mulf %212, %213 : vector<1x256xf32>
    %c0_67 = arith.constant 0 : index
    %c0_68 = arith.constant 0 : index
    %c0_69 = arith.constant 0 : index
    %215 = vector.load %arg6[%c0_67, %c0_68, %c0_69] : memref<1x1x256xf32, #tpu.memory_space<vmem>>, vector<1x1x256xf32>
    %216 = vector.shape_cast %215 : vector<1x1x256xf32> to vector<1x256xf32>
    %217 = vector.shape_cast %214 : vector<1x256xf32> to vector<1x1x256xf32>
    tpu.vector_store %arg6[%c0_67, %c0_68, %c0_69], %217 {strides = array<i32>} : memref<1x1x256xf32, #tpu.memory_space<vmem>>, vector<1x1x256xf32>,
    return
  }
  func.func @transform_0(%arg0: i32, %arg1: i32) -> (i32, i32, i32) {
    %c0_i32 = arith.constant 0 : i32
    %c0_i32_0 = arith.constant 0 : i32
    %c0_i32_1 = arith.constant 0 : i32
    return %arg0, %c0_i32, %c0_i32_0 : i32, i32, i32
  }
  func.func @transform_1(%arg0: i32, %arg1: i32) -> (i32, i32, i32) {
    %c0_i32 = arith.constant 0 : i32
    %c0_i32_0 = arith.constant 0 : i32
    %c0_i32_1 = arith.constant 0 : i32
    return %arg0, %c0_i32, %c0_i32_0 : i32, i32, i32
  }
  func.func @transform_2(%arg0: i32, %arg1: i32) -> (i32, i32, i32) {
    %c0_i32 = arith.constant 0 : i32
    %c0_i32_0 = arith.constant 0 : i32
    return %arg0, %c0_i32, %arg1 : i32, i32, i32
  }
  func.func @transform_3(%arg0: i32, %arg1: i32) -> (i32, i32, i32) {
    %c0_i32 = arith.constant 0 : i32
    %c0_i32_0 = arith.constant 0 : i32
    return %arg0, %c0_i32, %arg1 : i32, i32, i32
  }
  func.func @transform_4(%arg0: i32, %arg1: i32) -> (i32, i32, i32) {
    %c0_i32 = arith.constant 0 : i32
    %c0_i32_0 = arith.constant 0 : i32
    return %arg0, %c0_i32, %arg1 : i32, i32, i32
  }
}

</mosaic_0001>

<bundles_post_ra>
// kernel: tpu_custom_call.1
= control target key start
LH: loop header
LB: loop body
LE: loop exit
PB: predicated region body
PF: predicated region fallthrough
CT: control target
= control target key end

     0   :  { %9 = vsyncpa [#allocation3], 0  ;;  %s1837_s0 = inlined_call_operand.vmem [shape: f32[2,64,16], index: 0, kind: input, shape index: {}]   ;;  %s1838_s1 = inlined_call_operand.vmem [shape: f32[2,64,16], index: 1, kind: input, shape index: {}]   ;;  %s1839_s2 = inlined_call_operand.vmem [shape: f32[2,2,512], index: 2, kind: input, shape index: {}]   ;;  %s1840_s3 = inlined_call_operand.vmem [shape: f32[2,2,512], index: 3, kind: input, shape index: {}]   ;;  %s1841_s4 = inlined_call_operand.hbm [shape: f32[2,1,512], index: 4, kind: output, shape index: {}]  }
   0x1   :  { %11 = vsyncpa [#allocation3 + $0x1], 0  ;;  %s1446_s15 = smov 0   ;;  %s1448_s16 = smov 0  }
   0x2   :  { %s1450_s17 = smov 0   ;;  %s1452_s18 = smov 0  }
   0x3   :  { %s1454_s19 = smov 0   ;;  %s1456_s20 = smov 0  }
   0x4   :  { %s1458_s21 = smov 0   ;;  %s1460_s22 = smov 0  }
   0x5 LB: > { %s1213_s23 = sadd.s32 4294967295, %s1416_s22   ;;  %s1214_s24 = sadd.s32 4294967294, %s1416_s22   ;;  %s1416_s22 = sphi %s1460_s22, %s17_s22   ;;  %s1412_s21 = sphi %s1458_s21, %s1850_s21   ;;  %s1408_s20 = sphi %s1456_s20, %s1849_s20   ;;  %s1404_s19 = sphi %s1454_s19, %s1848_s19   ;;  %s1400_s18 = sphi %s1452_s18, %s1847_s18   ;;  %s1396_s17 = sphi %s1450_s17, %s1846_s17   ;;  %s1392_s16 = sphi %s1448_s16, %s1845_s16   ;;  %s1388_s15 = sphi %s1446_s15, %s1844_s15  }
   0x6   : > { %s26_s25 = sadd.s32 1, %s1408_s20  ;;  %s29_s26 = sadd.s32 1, %s1412_s21 }
   0x7   : > { %p27_p0 = scmp.ge.s32.totalorder %s26_s25, 2  ;;  %p156_p1 = scmp.ne.s32.totalorder %s1396_s17, %s1392_s16 }
   0x8   : > { %p157_p2 = scmp.eq.s32.totalorder %s1213_s23, 3  ;;  %p162_p5 = scmp.ne.s32.totalorder %s1392_s16, %s1388_s15 }
   0x9   : > { %s1852_s25 = smov (%p27_p0, %s26_s25), 0  ;;  %s1854_s26 = smov (!%p27_p0, %s29_s26), %s1412_s21 }
   0xa   : > { %s142_s27 = ssub.s32 %s1408_s20, %s1852_s25  ;;  %p1497_p3 = por %p157_p2, %p156_p1 }
   0xb   : > { %p31_p4 = scmp.ge.s32.totalorder %s1854_s26, 2  ;;  %p163_p6 = scmp.eq.s32.totalorder %s1214_s24, 3 }
   0xc   : > { %p1217_p7 = scmp.ge.s32.totalorder %s1416_s22, 1  ;;  %p223_p9 = scmp.lt.s32.totalorder %s1416_s22, 5 }
   0xd   : > { %s1856_s26 = smov (%p31_p4, %s1854_s26), 0  ;;  %p1506_p8 = por %p163_p6, %p162_p5 }
   0xe   : > { %s141_s30 = ssub.s32 %s1412_s21, %s1856_s26  ;;  %s146_s5 = sadd.s32 1, %s1396_s17 }
   0xf   : > { %s143_s6 = sor.u32 %s142_s27, %s141_s30  ;;  %p224_p10 = pnand %p1217_p7, %p223_p9 }
  0x10   : > { %p144_p11 = scmp.eq.s32.totalorder %s143_s6, 0  ;;  %p272_p12 = scmp.lt.s32.totalorder (!%p224_p10), %s1404_s19, 1  ;;  %v1418_v0 = vmov (!%p224_p10), 0   ;;  %v304_v1 = vlaneseq (!%p224_p10) }
  0x11   : > { %227 = sbr.rel (%p224_p10) target bundleno = 353 (0x161), region = 36  ;;  %s1519_s8 = sshll.u32 (!%p224_p10), %s1400_s18, 1  ;;  %558 = vmatprep.mubr.bf16.mxu0 (!%p224_p10), %v1418_v0  ;;  %849 = vmatprep.mubr.bf16.mxu1 (!%p224_p10), %v1418_v0 }
  0x12   : > { %s1515_s7 = scalar_select %p144_p11, %s1396_s17, %s146_s5  }
  0x13   : > { %p285_p13 = scmp.lt.s32.totalorder (!%p224_p10), %s1519_s8, 3  ;;  %v1530_v2 = vshrl.u32 (!%p224_p10), %v304_v1, 7 }
  0x15   : > { %v1539_v7 = vsub.s32 (!%p224_p10), 2, %v1530_v2  ;;  %v1544_v14 = vsub.s32 (!%p224_p10), 0, %v1530_v2  ;;  %v1549_v16 = vadd.s32 (!%p224_p10), 8, %v1530_v2 }
  0x18   : > { %s1525_s9 = scalar_select %p272_p12, %s1404_s19, 1 }
  0x19   : > { %s286_s10 = scalar_select %p285_p13, %s1519_s8, 3 }
  0x1a   : > { %s1224_s11 = sshll.u32 %s1525_s9, 2  ;;  %s1243_s5 = sshll.u32 %s1525_s9, 6 }
  0x1b   : > { %s288_s12 = sadd.s32 %s1224_s11, %s286_s10  ;;  %s1627_s11 = scalar_lea.vmem %s1837_s0, %s1243_s5 }
  0x1c   : > { %s1225_s13 = sshll.u32 %s288_s12, 1  ;;  %s1650_s14 = scalar_lea.vmem %s1838_s1, %s1243_s5 }
  0x1d   : > { %s290_s23 = scalar_lea.vmem %s1839_s2, %s1225_s13  ;;  %s300_s30 = scalar_lea.vmem %s1840_s3, %s1225_s13 }
  0x1e   : > { %v307_v3 = vld [vmem:[%s290_s23] sm:$0xf]  ;;  %s269_s9 = sand.u32 1, %s1392_s16   ;;  %s1239_s23 = sshll.u32 %s1404_s19, 2 }
  0x1f   : > { %v599_v4 = vld [vmem:[%s300_s30] sm:$0xf]  ;;  %v308_v5 = vfloor.f32 %v307_v3  ;;  %s1218_s18 = sshll.u32 %s269_s9, 1  ;;  %s1088_s24 = sadd.s32 %s1239_s23, %s1519_s8 }
  0x20   : > { %v600_v6 = vfloor.f32 %v599_v4  ;;  %s1240_s27 = sshll.u32 %s1088_s24, 4  ;;  %s271_s30 = scalar_lea.vmem [#allocation2], %s1218_s18 }
  0x21   : > { %v1245_v8 = vtrunc.f32 %v308_v5  ;;  %v310_v9 = vsub.f32 %v307_v3, %v308_v5  ;;  %s1092_s5 = sshll.u32 %s271_s30, 4  ;;  %s1076_s19 = scalar_lea.sflag [#allocation3], %s269_s9  ;;  %s1786_s5 = int_to_ptr.vmem [resolvable:$true] %s1092_s5 }
  0x22   : > { %v1247_v10 = vtrunc.f32 %v600_v6  ;;  %v602_v11 = vsub.f32 %v599_v4, %v600_v6  ;;  %s1322_s8 = scalar_lea.vmem %s1786_s5, 32  ;;  %s1420_s12 = smov [#allocation2]  }
  0x23   : > { %v1541_v12 = vcvt.f32.s32 %v1245_v8  ;;  %v314_v13 = vsub.f32 1.0, %v310_v9  ;;  %p1323_p0 = scmp.ne.s32.totalorder %s1786_s5, %s1322_s8  ;;  %s1326_s13 = sshll.u32 %s1420_s12, 4  ;;  %s1327_s13 = int_to_ptr.vmem [resolvable:$false] %s1326_s13 }
  0x24   : > { %v1546_v15 = vcvt.f32.s32 %v1247_v10  ;;  %v606_v17 = vsub.f32 1.0, %v602_v11  ;;  %p1329_p4 = scmp.lt.s32.totalorder %s1786_s5, %s1327_s13 }
  0x25   : > { %vm311_vm0 = vcmp.ge.s32.totalorder %v1541_v12, 0  ;;  %vm312_vm1 = vcmp.lt.s32.totalorder %v1541_v12, 16  ;;  %v1554_v18 = vadd.s32 1, %v1541_v12  ;;  %v328_v19 = vrot.slane %v1541_v12, %v1539_v7  ;;  %p1324_p1 = pnand %p1323_p0, %p1497_p3 }
  0x26   : > { %vm313_vm2 = vmand %vm311_vm0, %vm312_vm1  ;;  %vm603_vm3 = vcmp.ge.s32.totalorder %v1546_v15, 0  ;;  %vm604_vm4 = vcmp.lt.s32.totalorder %v1546_v15, 16  ;;  %v1561_v20 = vadd.s32 1, %v1546_v15  ;;  %v620_v21 = vrot.slane %v1546_v15, %v1539_v7 }
  0x27   : > { %v1565_v22 = vsel %vm313_vm2, %v314_v13, 0.0  ;;  %vm317_vm5 = vcmp.ge.s32.totalorder %v1554_v18, 0  ;;  %vm318_vm6 = vcmp.lt.s32.totalorder %v1554_v18, 16  ;;  %v336_v23 = vrot.slane %v328_v19, %v1544_v14  ;;  %vm605_vm7 = vmand %vm603_vm3, %vm604_vm4  ;;  %v499_v19 = vld [vmem:[%s1627_s11] sm:$0xff]  ;;  %p1325_p2 = pneg %p1324_p1 }
  0x28   : > { %vm319_vm8 = vmand %vm317_vm5, %vm318_vm6  ;;  %v349_v24 = vrot.slane %v1565_v22, %v1539_v7  ;;  %v371_v25 = vrot.slane %v1554_v18, %v1539_v7  ;;  %v1574_v26 = vsel %vm605_vm7, %v606_v17, 0.0  ;;  %vm609_vm9 = vcmp.ge.s32.totalorder %v1561_v20, 0 }
  0x29   : > { %v1577_v27 = vsel %vm319_vm8, %v310_v9, 0.0  ;;  %vm338_vm10 = vcmp.eq.s32.totalorder %v1530_v2, %v336_v23  ;;  %vm340_vm11 = vcmp.eq.s32.totalorder %v1549_v16, %v336_v23  ;;  %vm610_vm12 = vcmp.lt.s32.totalorder %v1561_v20, 16 }
  0x2a   : > { %v359_v28 = vrot.slane %v349_v24, %v1544_v14  ;;  %v379_v29 = vrot.slane %v371_v25, %v1544_v14  ;;  %v392_v30 = vrot.slane %v1577_v27, %v1539_v7  ;;  %vm611_vm13 = vmand %vm609_vm9, %vm610_vm12  ;;  %v628_v31 = vrot.slane %v620_v21, %v1544_v14  ;;  %v500_v21 = vld [vmem:[%s1627_s11 + $0x8] sm:$0xff] }
  0x2b   : > { %v1587_v32 = vsel %vm611_vm13, %v602_v11, 0.0  ;;  %v641_v33 = vrot.slane %v1574_v26, %v1539_v7  ;;  %v663_v34 = vrot.slane %v1561_v20, %v1539_v7  ;;  %v324_v35 = vrot.slane %v1541_v12, %v1544_v14 }
  0x2c   : > { %v361_v36 = vsel %vm338_vm10, %v359_v28, 0.0  ;;  %v363_v37 = vsel %vm340_vm11, %v359_v28, 0.0  ;;  %vm381_vm14 = vcmp.eq.s32.totalorder %v1530_v2, %v379_v29  ;;  %vm383_vm15 = vcmp.eq.s32.totalorder %v1549_v16, %v379_v29 }
  0x2d   : > { %v402_v38 = vrot.slane %v392_v30, %v1544_v14  ;;  %vm630_vm0 = vcmp.eq.s32.totalorder %v1530_v2, %v628_v31  ;;  %vm632_vm1 = vcmp.eq.s32.totalorder %v1549_v16, %v628_v31  ;;  %v651_v39 = vrot.slane %v641_v33, %v1544_v14 }
  0x2e   : > { %v671_v40 = vrot.slane %v663_v34, %v1544_v14  ;;  %v684_v41 = vrot.slane %v1587_v32, %v1539_v7  ;;  %v332_v42 = vrot.slane %v324_v35, %v1544_v14  ;;  %v345_v43 = vrot.slane %v1565_v22, %v1544_v14  ;;  %v791_v34 = vld [vmem:[%s1650_s14] sm:$0xff]  ;;  %v792_v35 = vld [vmem:[%s1650_s14 + $0x8] sm:$0xff] }
  0x2f   : > { %v404_v44 = vsel %vm381_vm14, %v402_v38, 0.0  ;;  %v406_v45 = vsel %vm383_vm15, %v402_v38, 0.0  ;;  %v653_v46 = vsel %vm630_vm0, %v651_v39, 0.0  ;;  %v655_v47 = vsel %vm632_vm1, %v651_v39, 0.0  ;;  %v501_v38 = vld [vmem:[%s1627_s11 + $0x10] sm:$0xff]  ;;  %v502_v39 = vld [vmem:[%s1627_s11 + $0x18] sm:$0xff] }
  0x30   : > { %v408_v48 = vadd.f32 %v404_v44, %v361_v36  ;;  %v410_v49 = vadd.f32 %v406_v45, %v363_v37  ;;  %vm673_vm2 = vcmp.eq.s32.totalorder %v1530_v2, %v671_v40  ;;  %vm675_vm3 = vcmp.eq.s32.totalorder %v1549_v16, %v671_v40  ;;  %v503_v44 = vld [vmem:[%s1627_s11 + $0x20] sm:$0xff]  ;;  %v504_v45 = vld [vmem:[%s1627_s11 + $0x28] sm:$0xff] }
  0x31   : > { %v694_v50 = vrot.slane %v684_v41, %v1544_v14  ;;  %vm337_vm4 = vcmp.eq.s32.totalorder %v1530_v2, %v332_v42  ;;  %vm339_vm5 = vcmp.eq.s32.totalorder %v1549_v16, %v332_v42  ;;  %v355_v51 = vrot.slane %v345_v43, %v1544_v14  ;;  %v793_v41 = vld [vmem:[%s1650_s14 + $0x10] sm:$0xff]  ;;  %v794_v42 = vld [vmem:[%s1650_s14 + $0x18] sm:$0xff] }
  0x32   : > { %v512_v52 = vpack.c.bf16 %v410_v49, %v408_v48  ;;  %v367_v53 = vrot.slane %v1554_v18, %v1544_v14  ;;  %v388_v54 = vrot.slane %v1577_v27, %v1544_v14  ;;  %v616_v55 = vrot.slane %v1546_v15, %v1544_v14  ;;  %v796_v48 = vld [vmem:[%s1650_s14 + $0x28] sm:$0xff] }
  0x33   : > { %v696_v56 = vsel %vm673_vm2, %v694_v50, 0.0  ;;  %v698_v57 = vsel %vm675_vm3, %v694_v50, 0.0  ;;  %v360_v58 = vsel %vm337_vm4, %v355_v51, 0.0  ;;  %v362_v59 = vsel %vm339_vm5, %v355_v51, 0.0  ;;  %v505_v50 = vld [vmem:[%s1627_s11 + $0x30] sm:$0xff]  ;;  %v506_v51 = vld [vmem:[%s1627_s11 + $0x38] sm:$0xff]  ;;  %s1784_s11 = scalar_lea.hbm %s1841_s4, %s1240_s27 }
  0x34   : > { %526 = vmatprep.subr.bf16.mxu0 %v512_v52  ;;  %v700_v60 = vadd.f32 %v696_v56, %v653_v46  ;;  %v702_v61 = vadd.f32 %v698_v57, %v655_v47  ;;  %v375_v62 = vrot.slane %v367_v53, %v1544_v14  ;;  %v398_v63 = vrot.slane %v388_v54, %v1544_v14  ;;  %v795_v47 = vld [vmem:[%s1650_s14 + $0x20] sm:$0xff]  ;;  %v797_v53 = vld [vmem:[%s1650_s14 + $0x30] sm:$0xff]  ;;  %v798_v54 = vld [vmem:[%s1650_s14 + $0x38] sm:$0xff]  ;;  %s1328_s14 = scalar_lea.vmem %s1327_s13, 64 }
  0x35   : > { %v624_v3 = vrot.slane %v616_v55, %v1544_v14  ;;  %v637_v4 = vrot.slane %v1574_v26, %v1544_v14  ;;  %v659_v5 = vrot.slane %v1561_v20, %v1544_v14  ;;  %v680_v6 = vrot.slane %v1587_v32, %v1544_v14  ;;  %p1330_p5 = scmp.lt.s32.totalorder %s1328_s14, %s1322_s8 }
  0x36   : > { %v804_v7 = vpack.c.bf16 %v702_v61, %v700_v60  ;;  %vm380_vm6 = vcmp.eq.s32.totalorder %v1530_v2, %v375_v62  ;;  %vm382_vm7 = vcmp.eq.s32.totalorder %v1549_v16, %v375_v62  ;;  %v507_v30 = vpack.c.bf16 %v500_v21, %v499_v19 }
  0x37   : > { %v403_v8 = vsel %vm380_vm6, %v398_v63, 0.0  ;;  %v405_v9 = vsel %vm382_vm7, %v398_v63, 0.0  ;;  %vm629_vm8 = vcmp.eq.s32.totalorder %v1530_v2, %v624_v3  ;;  %vm631_vm9 = vcmp.eq.s32.totalorder %v1549_v16, %v624_v3  ;;  %p1331_p6 = por %p1330_p5, %p1329_p4 }
  0x38   : > { %817 = vmatprep.subr.bf16.mxu1 %v804_v7  ;;  %v407_v10 = vadd.f32 %v403_v8, %v360_v58  ;;  %v409_v11 = vadd.f32 %v405_v9, %v362_v59  ;;  %v647_v13 = vrot.slane %v637_v4, %v1544_v14  ;;  %v667_v17 = vrot.slane %v659_v5, %v1544_v14 }
  0x39   : > { %v690_v23 = vrot.slane %v680_v6, %v1544_v14  ;;  %vm513_vm12 = vcmask 130048   ;;  %v799_v37 = vpack.c.bf16 %v792_v35, %v791_v34  ;;  %v508_v40 = vpack.c.bf16 %v502_v39, %v501_v38  ;;  %p1332_p7 = pnand %p1331_p6, %p1325_p2 }
  0x3a   : > { %v511_v24 = vpack.c.bf16 %v409_v11, %v407_v10  ;;  %v652_v25 = vsel %vm629_vm8, %v647_v13, 0.0  ;;  %v654_v28 = vsel %vm631_vm9, %v647_v13, 0.0  ;;  %vm672_vm10 = vcmp.eq.s32.totalorder %v1530_v2, %v667_v17 }
  0x3b   : > { %vm674_vm11 = vcmp.eq.s32.totalorder %v1549_v16, %v667_v17  ;;  %v695_v29 = vsel %vm672_vm10, %v690_v23, 0.0  ;;  %v800_v43 = vpack.c.bf16 %v794_v42, %v793_v41  ;;  %v509_v46 = vpack.c.bf16 %v504_v45, %v503_v44 }
  0x3c   : > { %527 = vmatpush1.bf16.msra.mxu0 %v511_v24  ;;  %v697_v14 = vsel %vm674_vm11, %v690_v23, 0.0  ;;  %v699_v31 = vadd.f32 %v695_v29, %v652_v25  ;;  %v801_v49 = vpack.c.bf16 %v796_v48, %v795_v47  ;;  %v510_v52 = vpack.c.bf16 %v506_v51, %v505_v50 }
  0x3d   : > { %v701_v33 = vadd.f32 %v697_v14, %v654_v28  ;;  %v802_v55 = vpack.c.bf16 %v798_v54, %v797_v53  ;;  %v413_v56 = vsub.s32 1, %v1530_v2 }
  0x3f   : > { %v803_v36 = vpack.c.bf16 %v701_v33, %v699_v31  ;;  %1229 = vmatmul.mubr.msk.bf16.vlgmr.msra.gmra.mrb[0].mxu0 %vm513_vm12, %v507_v30  ;;  %v414_v57 = vrot.slane %v1541_v12, %v413_v56  ;;  %v456_v58 = vrot.slane %v1554_v18, %v413_v56  ;;  %v434_v59 = vrot.slane %v1565_v22, %v413_v56 }
  0x40   : > { %568 = vmatprep.mubr.bf16.mxu0 %v1418_v0  ;;  %v476_v60 = vrot.slane %v1577_v27, %v413_v56  ;;  %v706_v8 = vrot.slane %v1546_v15, %v413_v56  ;;  %v748_v9 = vrot.slane %v1561_v20, %v413_v56 }
  0x41   : > { %818 = vmatpush1.bf16.msra.mxu1 %v803_v36  ;;  %v422_v61 = vrot.slane %v414_v57, %v413_v56  ;;  %v464_v62 = vrot.slane %v456_v58, %v413_v56  ;;  %v444_v63 = vrot.slane %v434_v59, %v413_v56 }
  0x42   : > { %v486_v3 = vrot.slane %v476_v60, %v413_v56  ;;  %v714_v23 = vrot.slane %v706_v8, %v413_v56  ;;  %v756_v25 = vrot.slane %v748_v9, %v413_v56 }
  0x43   : > { %vm427_vm13 = vcmp.eq.s32.totalorder %v1530_v2, %v422_v61  ;;  %vm469_vm14 = vcmp.eq.s32.totalorder %v1530_v2, %v464_v62  ;;  %vm429_vm1 = vcmp.eq.s32.totalorder %v1549_v16, %v422_v61  ;;  %vm471_vm2 = vcmp.eq.s32.totalorder %v1549_v16, %v464_v62 }
  0x44   : > { %1233 = vmatmul.mubr.msk.bf16.vlgmr.msra.gmra.mrb[0].mxu1 %vm513_vm12, %v799_v37  ;;  %v449_v6 = vsel %vm427_vm13, %v444_v63, 0.0  ;;  %v491_v7 = vsel %vm469_vm14, %v486_v3, 0.0  ;;  %vm719_vm5 = vcmp.eq.s32.totalorder %v1530_v2, %v714_v23  ;;  %vm761_vm6 = vcmp.eq.s32.totalorder %v1530_v2, %v756_v25 }
  0x45   : > { %859 = vmatprep.mubr.bf16.mxu1 %v1418_v0  ;;  %v1696_v19 = vadd.f32 %v491_v7, %v449_v6  ;;  %v451_v31 = vsel %vm429_vm1, %v444_v63, 0.0  ;;  %v493_v33 = vsel %vm471_vm2, %v486_v3, 0.0  ;;  %vm721_vm7 = vcmp.eq.s32.totalorder %v1549_v16, %v714_v23 }
  0x46   : > { %vm763_vm9 = vcmp.eq.s32.totalorder %v1549_v16, %v756_v25  ;;  %v1720_v38 = vadd.f32 %v493_v33, %v451_v31  ;;  %vm1072_vm13 = vcmp.lt.s32.totalorder %v304_v1, 256 }
  0x47   : > { %1230 = vmatmul.mubr.msk.bf16.gmra.mrb[4].mxu0 %vm513_vm12, %v508_v40 }
  0x48   : > { %578 = vmatprep.mubr.bf16.mxu0 %v1418_v0 }
  0x4c   : > { %1234 = vmatmul.mubr.msk.bf16.gmra.mrb[4].mxu1 %vm513_vm12, %v800_v43 }
  0x4d   : > { %869 = vmatprep.mubr.bf16.mxu1 %v1418_v0 }
  0x4f   : > { %1231 = vmatmul.mubr.msk.bf16.gmra.mrb[8].mxu0 %vm513_vm12, %v509_v46 }
  0x50   : > { %588 = vmatprep.mubr.bf16.mxu0 %v1418_v0 }
  0x54   : > { %1235 = vmatmul.mubr.msk.bf16.gmra.mrb[8].mxu1 %vm513_vm12, %v801_v49 }
  0x55   : > { %879 = vmatprep.mubr.bf16.mxu1 %v1418_v0  ;;  %v417_v0 = vsub.s32 3, %v1530_v2 }
  0x57   : > { %1232 = vmatmul.mubr.msk.bf16.gmra.mrb[12].mxu0 %vm513_vm12, %v510_v52  ;;  %v418_v4 = vrot.slane %v1541_v12, %v417_v0  ;;  %v460_v5 = vrot.slane %v1554_v18, %v417_v0  ;;  %v438_v11 = vrot.slane %v1565_v22, %v417_v0  ;;  %v480_v13 = vrot.slane %v1577_v27, %v417_v0 }
  0x58   : > { %v710_v21 = vrot.slane %v1546_v15, %v417_v0  ;;  %v726_v12 = vrot.slane %v1574_v26, %v413_v56  ;;  %v768_v18 = vrot.slane %v1587_v32, %v413_v56  ;;  %v752_v24 = vrot.slane %v1561_v20, %v417_v0 }
  0x59   : > { %v426_v10 = vrot.slane %v418_v4, %v413_v56  ;;  %v468_v17 = vrot.slane %v460_v5, %v413_v56  ;;  %v448_v28 = vrot.slane %v438_v11, %v413_v56  ;;  %v490_v29 = vrot.slane %v480_v13, %v413_v56 }
  0x5a   : > { %v730_v22 = vrot.slane %v1574_v26, %v417_v0  ;;  %v718_v15 = vrot.slane %v710_v21, %v413_v56  ;;  %v772_v27 = vrot.slane %v1587_v32, %v417_v0  ;;  %v736_v20 = vrot.slane %v726_v12, %v413_v56 }
  0x5b   : > { %vm428_vm15 = vcmp.eq.s32.totalorder %v1530_v2, %v426_v10  ;;  %vm470_vm0 = vcmp.eq.s32.totalorder %v1530_v2, %v468_v17  ;;  %vm430_vm3 = vcmp.eq.s32.totalorder %v1549_v16, %v426_v10  ;;  %vm472_vm4 = vcmp.eq.s32.totalorder %v1549_v16, %v468_v17 }
  0x5c   : > { %1236 = vmatmul.mubr.msk.bf16.gmra.mrb[12].mxu1 %vm513_vm12, %v802_v55  ;;  %v778_v30 = vrot.slane %v768_v18, %v413_v56  ;;  %v760_v14 = vrot.slane %v752_v24, %v413_v56  ;;  %v450_v26 = vsel %vm428_vm15, %v448_v28, 0.0  ;;  %v492_v34 = vsel %vm470_vm0, %v490_v29, 0.0 }
  0x5d   : > { %v452_v32 = vsel %vm430_vm3, %v448_v28, 0.0  ;;  %v494_v35 = vsel %vm472_vm4, %v490_v29, 0.0  ;;  %vm720_vm8 = vcmp.eq.s32.totalorder %v1530_v2, %v718_v15  ;;  %v740_v36 = vrot.slane %v730_v22, %v413_v56 }
  0x5e   : > { %v782_v37 = vrot.slane %v772_v27, %v413_v56  ;;  %vm762_vm10 = vcmp.eq.s32.totalorder %v1530_v2, %v760_v14  ;;  %vm722_vm11 = vcmp.eq.s32.totalorder %v1549_v16, %v718_v15  ;;  %vm764_vm12 = vcmp.eq.s32.totalorder %v1549_v16, %v760_v14 }
  0x5f   : > { %v1724_v40 = vadd.f32 %v492_v34, %v450_v26  ;;  %v1726_v41 = vadd.f32 %v494_v35, %v452_v32  ;;  %v741_v42 = vsel %vm719_vm5, %v736_v20, 0.0  ;;  %v783_v43 = vsel %vm761_vm6, %v778_v30, 0.0 }
  0x60   : > { %v743_v45 = vsel %vm721_vm7, %v736_v20, 0.0  ;;  %v785_v46 = vsel %vm763_vm9, %v778_v30, 0.0  ;;  %v742_v47 = vsel %vm720_vm8, %v740_v36, 0.0  ;;  %v784_v48 = vsel %vm762_vm10, %v782_v37, 0.0 }
  0x61   : > { %v744_v50 = vsel %vm722_vm11, %v740_v36, 0.0  ;;  %v786_v51 = vsel %vm764_vm12, %v782_v37, 0.0  ;;  %v1738_v55 = vadd.f32 %v783_v43, %v741_v42  ;;  %v1741_v57 = vadd.f32 %v785_v46, %v743_v45 }
  0x62   : > { %v1744_v59 = vadd.f32 %v784_v48, %v742_v47  ;;  %v1746_v61 = vadd.f32 %v786_v51, %v744_v50 }
 0x112   : > { %v560_v39 = vpop.f32.mrb[0].mxu0 }
 0x113   : > { %v562_v44 = vpop.f32.mrb[1].mxu0  ;;  %v890_v52 = vmul.f32 %v560_v39, %v1696_v19 }
 0x114   : > { %v564_v49 = vpop.f32.mrb[2].mxu0  ;;  %v891_v56 = vmul.f32 %v562_v44, %v1724_v40 }
 0x115   : > { %v892_v53 = vmul.f32 %v564_v49, %v1720_v38  ;;  %v566_v54 = vpop.f32.mrb[3].mxu0 }
 0x116   : > { %v893_v16 = vmul.f32 %v566_v54, %v1726_v41 }
 0x117   : > { %v851_v58 = vpop.f32.mrb[0].mxu1  ;;  %v894_v60 = vadd.f32 %v892_v53, %v890_v52 }
 0x118   : > { %v853_v62 = vpop.f32.mrb[1].mxu1  ;;  %v901_v0 = vadd.f32 %v893_v16, %v891_v56  ;;  %v908_v4 = vmul.f32 %v851_v58, %v1738_v55 }
 0x119   : > { %v895_v63 = vrot.slane %v894_v60, 4  ;;  %v855_v3 = vpop.f32.mrb[2].mxu1  ;;  %v909_v9 = vmul.f32 %v853_v62, %v1744_v59 }
 0x11a   : > { %v910_v5 = vmul.f32 %v855_v3, %v1741_v57  ;;  %v902_v6 = vrot.slane %v901_v0, 4  ;;  %v857_v7 = vpop.f32.mrb[3].mxu1  ;;  %v570_v8 = vpop.f32.mrb[4].mxu0 }
 0x11b   : > { %v896_v10 = vadd.f32 %v895_v63, %v894_v60  ;;  %v911_v11 = vmul.f32 %v857_v7, %v1746_v61  ;;  %v572_v13 = vpop.f32.mrb[5].mxu0  ;;  %v930_v24 = vmul.f32 %v570_v8, %v1696_v19 }
 0x11c   : > { %v912_v17 = vadd.f32 %v910_v5, %v908_v4  ;;  %v903_v21 = vadd.f32 %v902_v6, %v901_v0  ;;  %v574_v23 = vpop.f32.mrb[6].mxu0  ;;  %v931_v15 = vmul.f32 %v572_v13, %v1724_v40 }
 0x11d   : > { %v897_v12 = vrot.slane %v896_v10, 2  ;;  %v919_v18 = vadd.f32 %v911_v11, %v909_v9  ;;  %v932_v25 = vmul.f32 %v574_v23, %v1720_v38  ;;  %v576_v28 = vpop.f32.mrb[7].mxu0 }
 0x11e   : > { %v913_v29 = vrot.slane %v912_v17, 4  ;;  %v904_v22 = vrot.slane %v903_v21, 2  ;;  %v933_v27 = vmul.f32 %v576_v28, %v1726_v41 }
 0x11f   : > { %v898_v20 = vadd.f32 %v897_v12, %v896_v10  ;;  %v920_v30 = vrot.slane %v919_v18, 4  ;;  %v861_v14 = vpop.f32.mrb[4].mxu1  ;;  %v934_v26 = vadd.f32 %v932_v25, %v930_v24 }
 0x120   : > { %v914_v31 = vadd.f32 %v913_v29, %v912_v17  ;;  %v905_v33 = vadd.f32 %v904_v22, %v903_v21  ;;  %v948_v34 = vmul.f32 %v861_v14, %v1738_v55  ;;  %v863_v32 = vpop.f32.mrb[5].mxu1  ;;  %v941_v35 = vadd.f32 %v933_v27, %v931_v15 }
 0x121   : > { %v899_v36 = vrot.slane %v898_v20, 1  ;;  %v921_v37 = vadd.f32 %v920_v30, %v919_v18  ;;  %v949_v39 = vmul.f32 %v863_v32, %v1744_v59  ;;  %v935_v42 = vrot.slane %v934_v26, 4  ;;  %v865_v43 = vpop.f32.mrb[6].mxu1 }
 0x122   : > { %v915_v44 = vrot.slane %v914_v31, 2  ;;  %v906_v45 = vrot.slane %v905_v33, 1  ;;  %v950_v46 = vmul.f32 %v865_v43, %v1741_v57  ;;  %v942_v47 = vrot.slane %v941_v35, 4  ;;  %v867_v48 = vpop.f32.mrb[7].mxu1  ;;  %v580_v49 = vpop.f32.mrb[8].mxu0 }
 0x123   : > { %v900_v50 = vadd.f32 %v899_v36, %v898_v20  ;;  %v922_v51 = vrot.slane %v921_v37, 2  ;;  %v936_v52 = vadd.f32 %v935_v42, %v934_v26  ;;  %v951_v53 = vmul.f32 %v867_v48, %v1746_v61  ;;  %v582_v54 = vpop.f32.mrb[9].mxu0 }
 0x124   : > { %v916_v56 = vadd.f32 %v915_v44, %v914_v31  ;;  %v907_v16 = vadd.f32 %v906_v45, %v905_v33  ;;  %v952_v58 = vadd.f32 %v950_v46, %v948_v34  ;;  %v943_v60 = vadd.f32 %v942_v47, %v941_v35  ;;  %v584_v62 = vpop.f32.mrb[10].mxu0 }
 0x125   : > { %v923_v0 = vadd.f32 %v922_v51, %v921_v37  ;;  %v937_v63 = vrot.slane %v936_v52, 2  ;;  %v959_v3 = vadd.f32 %v951_v53, %v949_v39  ;;  %v970_v4 = vmul.f32 %v580_v49, %v1696_v19  ;;  %v586_v5 = vpop.f32.mrb[11].mxu0 }
 0x126   : > { %v917_v6 = vrot.slane %v916_v56, 1  ;;  %v953_v7 = vrot.slane %v952_v58, 4  ;;  %v944_v8 = vrot.slane %v943_v60, 2  ;;  %v971_v9 = vmul.f32 %v582_v54, %v1724_v40 }
 0x127   : > { %v924_v10 = vrot.slane %v923_v0, 1  ;;  %v938_v11 = vadd.f32 %v937_v63, %v936_v52  ;;  %v960_v13 = vrot.slane %v959_v3, 4  ;;  %v871_v17 = vpop.f32.mrb[8].mxu1  ;;  %v972_v21 = vmul.f32 %v584_v62, %v1720_v38 }
 0x128   : > { %v918_v23 = vadd.f32 %v917_v6, %v916_v56  ;;  %v954_v12 = vadd.f32 %v953_v7, %v952_v58  ;;  %v945_v18 = vadd.f32 %v944_v8, %v943_v60  ;;  %v988_v24 = vmul.f32 %v871_v17, %v1738_v55  ;;  %v873_v25 = vpop.f32.mrb[9].mxu1 }
 0x129   : > { %v925_v28 = vadd.f32 %v924_v10, %v923_v0  ;;  %v939_v29 = vrot.slane %v938_v11, 1  ;;  %v961_v22 = vadd.f32 %v960_v13, %v959_v3  ;;  %v989_v15 = vmul.f32 %v873_v25, %v1744_v59  ;;  %v875_v27 = vpop.f32.mrb[10].mxu1 }
 0x12a   : > { %v926_v20 = vmul.f32 %v918_v23, %v900_v50  ;;  %v955_v30 = vrot.slane %v954_v12, 2  ;;  %v946_v14 = vrot.slane %v945_v18, 1  ;;  %v974_v26 = vadd.f32 %v972_v21, %v970_v4  ;;  %v877_v31 = vpop.f32.mrb[11].mxu1  ;;  %v590_v33 = vpop.f32.mrb[12].mxu0 }
 0x12b   : > { %v927_v34 = vmul.f32 %v925_v28, %v907_v16  ;;  %v940_v32 = vadd.f32 %v939_v29, %v938_v11  ;;  %v962_v35 = vrot.slane %v961_v22, 2  ;;  %v990_v36 = vmul.f32 %v875_v27, %v1741_v57  ;;  %v592_v37 = vpop.f32.mrb[13].mxu0 }
 0x12c   : > { %v956_v39 = vadd.f32 %v955_v30, %v954_v12  ;;  %v947_v42 = vadd.f32 %v946_v14, %v945_v18  ;;  %v975_v43 = vrot.slane %v974_v26, 4  ;;  %v973_v44 = vmul.f32 %v586_v5, %v1726_v41  ;;  %v594_v45 = vpop.f32.mrb[14].mxu0 }
 0x12d   : > { %v963_v46 = vadd.f32 %v962_v35, %v961_v22  ;;  %v992_v47 = vadd.f32 %v990_v36, %v988_v24  ;;  %v991_v48 = vmul.f32 %v877_v31, %v1746_v61  ;;  %v1010_v49 = vmul.f32 %v590_v33, %v1696_v19  ;;  %v596_v50 = vpop.f32.mrb[15].mxu0 }
 0x12e   : > { %v957_v51 = vrot.slane %v956_v39, 1  ;;  %v976_v52 = vadd.f32 %v975_v43, %v974_v26  ;;  %v981_v53 = vadd.f32 %v973_v44, %v971_v9  ;;  %v1011_v54 = vmul.f32 %v592_v37, %v1724_v40 }
 0x12f   : > { %v964_v56 = vrot.slane %v963_v46, 1  ;;  %v993_v16 = vrot.slane %v992_v47, 4  ;;  %v999_v58 = vadd.f32 %v991_v48, %v989_v15  ;;  %v881_v60 = vpop.f32.mrb[12].mxu1  ;;  %v1012_v62 = vmul.f32 %v594_v45, %v1720_v38 }
 0x130   : > { %v958_v0 = vadd.f32 %v957_v51, %v956_v39  ;;  %v977_v63 = vrot.slane %v976_v52, 2  ;;  %v982_v3 = vrot.slane %v981_v53, 4  ;;  %v1028_v4 = vmul.f32 %v881_v60, %v1738_v55  ;;  %v883_v5 = vpop.f32.mrb[13].mxu1 }
 0x131   : > { %v965_v6 = vadd.f32 %v964_v56, %v963_v46  ;;  %v994_v19 = vadd.f32 %v993_v16, %v992_v47  ;;  %v1000_v7 = vrot.slane %v999_v58, 4  ;;  %v1029_v8 = vmul.f32 %v883_v5, %v1744_v59  ;;  %v885_v9 = vpop.f32.mrb[14].mxu1 }
 0x132   : > { %v966_v10 = vmul.f32 %v958_v0, %v940_v32  ;;  %v978_v40 = vadd.f32 %v977_v63, %v976_v52  ;;  %v983_v11 = vadd.f32 %v982_v3, %v981_v53  ;;  %v1014_v13 = vadd.f32 %v1012_v62, %v1010_v49  ;;  %v887_v17 = vpop.f32.mrb[15].mxu1 }
 0x133   : > { %v967_v21 = vmul.f32 %v965_v6, %v947_v42  ;;  %v995_v23 = vrot.slane %v994_v19, 2  ;;  %v1001_v38 = vadd.f32 %v1000_v7, %v999_v58  ;;  %v1030_v12 = vmul.f32 %v885_v9, %v1741_v57 }
 0x134   : > { %v968_v18 = vadd.f32 %v966_v10, %v926_v20  ;;  %v979_v24 = vrot.slane %v978_v40, 1  ;;  %v984_v55 = vrot.slane %v983_v11, 2  ;;  %v1015_v25 = vrot.slane %v1014_v13, 4 }
 0x135   : > { %v969_v28 = vadd.f32 %v967_v21, %v927_v34  ;;  %v996_v29 = vadd.f32 %v995_v23, %v994_v19  ;;  %v1002_v22 = vrot.slane %v1001_v38, 2  ;;  %v1032_v15 = vadd.f32 %v1030_v12, %v1028_v4 }
 0x136   : > { %v980_v59 = vadd.f32 %v979_v24, %v978_v40  ;;  %v985_v27 = vadd.f32 %v984_v55, %v983_v11  ;;  %v1016_v30 = vadd.f32 %v1015_v25, %v1014_v13  ;;  %v1013_v14 = vmul.f32 %v596_v50, %v1726_v41 }
 0x137   : > { %v997_v26 = vrot.slane %v996_v29, 1  ;;  %v1003_v31 = vadd.f32 %v1002_v22, %v1001_v38  ;;  %v1033_v33 = vrot.slane %v1032_v15, 4  ;;  %v1031_v32 = vmul.f32 %v887_v17, %v1746_v61 }
 0x138   : > { %v986_v35 = vrot.slane %v985_v27, 1  ;;  %v1017_v57 = vrot.slane %v1016_v30, 2  ;;  %v1021_v20 = vadd.f32 %v1013_v14, %v1011_v54  ;;  %v1419_v5 = vmov 1966171168  }
 0x139   : > { %v998_v36 = vadd.f32 %v997_v26, %v996_v29  ;;  %v1004_v37 = vrot.slane %v1003_v31, 1  ;;  %v1034_v39 = vadd.f32 %v1033_v33, %v1032_v15  ;;  %v1039_v34 = vadd.f32 %v1031_v32, %v1029_v8 }
 0x13a   : > { %v987_v42 = vadd.f32 %v986_v35, %v985_v27  ;;  %v1018_v43 = vadd.f32 %v1017_v57, %v1016_v30  ;;  %v1022_v44 = vrot.slane %v1021_v20, 4  ;;  %v1056_v6 = vunpack.c.l.s4 %v1419_v5 }
 0x13b   : > { %v1006_v45 = vmul.f32 %v998_v36, %v980_v59  ;;  %v1005_v46 = vadd.f32 %v1004_v37, %v1003_v31  ;;  %v1035_v47 = vrot.slane %v1034_v39, 2  ;;  %v1040_v48 = vrot.slane %v1039_v34, 4 }
 0x13c   : > { %v1019_v41 = vrot.slane %v1018_v43, 1  ;;  %v1023_v49 = vadd.f32 %v1022_v44, %v1021_v20  ;;  %v1057_v10 = vunpack.c.0.s8 %v1056_v6 }
 0x13d   : > { %v1008_v50 = vadd.f32 %v1006_v45, %v968_v18  ;;  %v1007_v51 = vmul.f32 %v1005_v46, %v987_v42  ;;  %v1036_v52 = vadd.f32 %v1035_v47, %v1034_v39  ;;  %v1041_v61 = vadd.f32 %v1040_v48, %v1039_v34 }
 0x13e   : > { %v1024_v53 = vrot.slane %v1023_v49, 2  ;;  %v1020_v56 = vadd.f32 %v1019_v41, %v1018_v43  ;;  %v1060_v17 = vsub.s32 %v1057_v10, %v1530_v2 }
 0x13f   : > { %v1009_v54 = vadd.f32 %v1007_v51, %v969_v28  ;;  %v1037_v16 = vrot.slane %v1036_v52, 1  ;;  %v1042_v58 = vrot.slane %v1041_v61, 2 }
 0x140   : > { %v1025_v60 = vadd.f32 %v1024_v53, %v1023_v49 }
 0x141   : > { %v1038_v62 = vadd.f32 %v1037_v16, %v1036_v52  ;;  %v1043_v0 = vadd.f32 %v1042_v58, %v1041_v61 }
 0x142   : > { %v1026_v63 = vrot.slane %v1025_v60, 1 }
 0x143   : > { %v1046_v3 = vmul.f32 %v1038_v62, %v1020_v56  ;;  %v1044_v4 = vrot.slane %v1043_v0, 1 }
 0x144   : > { %v1027_v19 = vadd.f32 %v1026_v63, %v1025_v60 }
 0x145   : > { %v1048_v7 = vadd.f32 %v1046_v3, %v1008_v50  ;;  %v1045_v8 = vadd.f32 %v1044_v4, %v1043_v0 }
 0x147   : > { %v1047_v9 = vmul.f32 %v1045_v8, %v1027_v19  ;;  %v1050_v40 = vmul.f32 0.25, %v1048_v7 }
 0x149   : > { %v1049_v11 = vadd.f32 %v1047_v9, %v1009_v54 }
 0x14b   : > { %v1051_v13 = vmul.f32 0.25, %v1049_v11 }
 0x14d   : > { %v1054_v21 = vcombine.low %v1050_v40, %v1051_v13 }
 0x14f   : > { %v1061_v23 = vrot.slane %v1054_v21, %v1060_v17 }
 0x151   : > { %v1068_v38 = vrot.slane %v1061_v23, %v1060_v17 }
 0x153   : > { %1074 = vst.msk [vmem:[%s271_s30] sm:$0x3] %vm1072_vm13, %v1068_v38 }
 0x154   : > { %1335 = shalt.err (!%p1332_p7)
}
 0x155   : > { %s1336_s9 = scalar_lea.hbm %s1784_s11, 32  ;;  %s1340_s24 = scalar_lea.hbm %s1841_s4, 128 }
 0x156   : > { %p1337_p9 = scmp.ne.s32.totalorder %s1784_s11, %s1336_s9  ;;  %p1341_p12 = scmp.lt.u32.totalorder %s1784_s11, %s1841_s4 }
 0x157   : > { %p1342_p13 = scmp.lt.u32.totalorder %s1340_s24, %s1336_s9  ;;  %p1344_p1 = scmp.lt.u32.totalorder %s1336_s9, %s1784_s11 }
 0x158   : > { %p1338_p10 = pnand %p1337_p9, %p1497_p3 }
 0x159   : > { %p1343_p0 = por %p1342_p13, %p1341_p12 }
 0x15a   : > { %p1339_p11 = pneg %p1338_p10 }
 0x15b   : > { %p1345_p2 = por %p1344_p1, %p1343_p0 }
 0x15d   : > { %p1346_p4 = pnand %p1345_p2, %p1339_p11 }
 0x15f   : > { %1349 = shalt.err (!%p1346_p4)
}
 0x160   : > { %1249 = dma.vmem_to_hbm [thread:$0]  (%p1497_p3), %s1786_s5, 32, %s1784_s11, %s1076_s19  }
 0x161 PF: > { %p1255_p5 = scmp.ge.s32.totalorder %s1416_s22, 2  ;;  %s1104_s6 = sand.u32 1, %s1388_s15  }
 0x162   : > { %s1105_s10 = scalar_lea.sflag [#allocation3], %s1104_s6 }
 0x163   : > { %p1252_p6 = pnand %p1255_p5, %p1506_p8 }
 0x165   : > { %1383 = dma.done.wait (!%p1252_p6), %s1105_s10, 32  }
 0x166   : > { %1385 = vsyncadd (!%p1252_p6), %s1105_s10, 4294967264  ;;  %s17_s22 = sadd.s32 1, %s1416_s22   ;;  %s1844_s15 = smov %s1392_s16 }
 0x167   : > { %p14_p7 = scmp.ge.s32.totalorder %s17_s22, 6   ;;  %s1845_s16 = smov %s1396_s17 }
 0x168   : > { %s1846_s17 = smov %s1515_s7  ;;  %s1847_s18 = smov %s1408_s20 }
 0x169   : > { %s1848_s19 = smov %s1412_s21  ;;  %s1849_s20 = smov %s1852_s25 }
 0x16a   : > { %s1850_s21 = smov %s1856_s26  ;;  %16 = sbr.rel (!%p14_p7) target bundleno = 5 (0x5), region = 80 }
 0x171   :  { %1110 = vsyncpa [#allocation3], 1 }
 0x172   :  { %1112 = vsyncpa [#allocation3 + $0x1], 1 }

</bundles_post_ra>
